<compile_context>
chip_gen: v5e
topology: v5e:2x2
jax: 0.10.0
libtpu: 0.0.40
codegen_flags: <defaults>
</compile_context>

<pallas_src>
import math

import jax
import jax.numpy as jnp
from jax.experimental import pallas as pl
from jax.experimental.pallas import tpu as pltpu


# ----------------------------- Pallas kernel --------------------------------


def _gelu_new_f32(y):
    c = math.sqrt(2.0 / math.pi)
    return 0.5 * y * (1.0 + jnp.tanh(c * (y + 0.044715 * y * y * y)))


def _mlp_fused_kernel(x_ref, w1_ref, b1_ref, w2_ref, b2_ref, o_ref, acc_ref):
    """One (i, j) grid step of out = gelu_new(x @ W1 + b1) @ W2 + b2.

    i tiles the token (M) axis, j tiles the intermediate (reduction) axis.
    """
    j = pl.program_id(1)

    @pl.when(j == 0)
    def _init():
        acc_ref[...] = jnp.zeros_like(acc_ref)

    # c_fc slice: (tm, K) @ (K, tj) -> f32, bias add, gelu_new (tanh on EUP).
    h = jnp.dot(x_ref[...], w1_ref[...], preferred_element_type=jnp.float32)
    h = _gelu_new_f32(h + b1_ref[...].astype(jnp.float32))

    # c_proj partial: (tm, tj) @ (tj, H), accumulated in f32.
    acc_ref[...] += jnp.dot(
        h.astype(w2_ref.dtype), w2_ref[...], preferred_element_type=jnp.float32
    )

    @pl.when(j == pl.num_programs(1) - 1)
    def _finalize():
        y = acc_ref[...] + b2_ref[...].astype(jnp.float32)
        o_ref[...] = y.astype(o_ref.dtype)


def _pick_tile(dim, candidates):
    """Largest candidate tile that evenly divides `dim`, else the full dim."""
    for t in candidates:
        if t <= dim and dim % t == 0:
            return t
    return dim


# ----------------------------- module wrapper --------------------------------


def gpt2_mlp_forward(params, hidden_states):
    """GPT2MLP.forward: c_fc -> gelu_new -> c_proj -> dropout(identity)."""
    *lead, H = hidden_states.shape
    x2d = hidden_states.reshape(-1, H)
    M = x2d.shape[0]

    w1, b1 = params["fc_w"], params["fc_b"]        # (H, INNER), (INNER,)
    w2, b2 = params["proj_w"], params["proj_b"]    # (INNER, H), (H,)
    K, inner = w1.shape
    assert K == H, (w1.shape, H)
    assert w2.shape == (inner, H), w2.shape

    # M tile -> sublanes (multiple of 8); inner tile -> lanes (multiple of 128,
    # 512 preferred to amortize the per-step overhead and feed the 256-wide MXU).
    tm = _pick_tile(M, (256, 128, 64, 32, 16, 8))
    tj = _pick_tile(inner, (512, 256, 128))
    grid = (M // tm, inner // tj)

    itemsize = jnp.dtype(x2d.dtype).itemsize
    cost = pl.CostEstimate(
        flops=2 * M * K * inner + 2 * M * inner * H,
        transcendentals=M * inner,
        bytes_accessed=(x2d.size + w1.size + b1.size + w2.size + b2.size + M * H)
        * itemsize,
    )

    out = pl.pallas_call(
        _mlp_fused_kernel,
        out_shape=jax.ShapeDtypeStruct((M, H), x2d.dtype),
        grid_spec=pltpu.PrefetchScalarGridSpec(
            num_scalar_prefetch=0,
            grid=grid,
            in_specs=[
                pl.BlockSpec((tm, K), lambda i, j: (i, 0)),   # x (j-invariant)
                pl.BlockSpec((K, tj), lambda i, j: (0, j)),   # c_fc weight cols
                pl.BlockSpec((1, tj), lambda i, j: (0, j)),   # c_fc bias
                pl.BlockSpec((tj, H), lambda i, j: (j, 0)),   # c_proj weight rows
                pl.BlockSpec((1, H), lambda i, j: (0, 0)),    # c_proj bias (resident)
            ],
            out_specs=pl.BlockSpec((tm, H), lambda i, j: (i, 0)),
            scratch_shapes=[pltpu.VMEM((tm, H), jnp.float32)],
        ),
        compiler_params=pltpu.CompilerParams(
            dimension_semantics=("parallel", "arbitrary"),
            vmem_limit_bytes=64 * 1024 * 1024,
        ),
        cost_estimate=cost,
    )(x2d, w1, b1.reshape(1, inner), w2, b2.reshape(1, H))

    # resid dropout: identity at inference.
    return out.reshape(*lead, H)


# ---------------------------------- main -------------------------------------

if __name__ == "__main__":
    HIDDEN = 64            # config.hidden_size (embed_dim)
    INNER = 4 * HIDDEN     # intermediate_size
    B, S = 2, 8

    key = jax.random.PRNGKey(0)
    k_fc, k_proj, k_bfc, k_bproj, k_x = jax.random.split(key, 5)

    params = {
        "fc_w": (0.02 * jax.random.normal(k_fc, (HIDDEN, INNER))).astype(jnp.float32),
        "fc_b": (0.02 * jax.random.normal(k_bfc, (INNER,))).astype(jnp.float32),
        "proj_w": (0.02 * jax.random.normal(k_proj, (INNER, HIDDEN))).astype(jnp.float32),
        "proj_b": (0.02 * jax.random.normal(k_bproj, (HIDDEN,))).astype(jnp.float32),
    }
    hidden_states = jax.random.normal(k_x, (B, S, HIDDEN), dtype=jnp.float32)

    out = gpt2_mlp_forward(params, hidden_states)
    out = jax.block_until_ready(out)

    # reference (plain JAX) check of the forward semantics
    def _gelu_new(y):
        return 0.5 * y * (1.0 + jnp.tanh(
            math.sqrt(2.0 / math.pi) * (y + 0.044715 * y * y * y)))

    x2d = hidden_states.reshape(-1, HIDDEN)
    ref = _gelu_new(x2d @ params["fc_w"] + params["fc_b"])
    ref = (ref @ params["proj_w"] + params["proj_b"]).reshape(B, S, HIDDEN)

    assert out.shape == (B, S, HIDDEN), out.shape
    assert jnp.all(jnp.isfinite(out))
    assert jnp.allclose(out, ref, atol=1e-4, rtol=1e-4), float(
        jnp.max(jnp.abs(out - ref)))
    print("KERNEL_OK")
</pallas_src>

<mosaic_0001>
module attributes {stable_mosaic.version = 11 : i64} {
  func.func @_mlp_fused_kernel(%arg0: i32, %arg1: i32, %arg2: memref<16x64xf32, #tpu.memory_space<vmem>>, %arg3: memref<64x256xf32, #tpu.memory_space<vmem>>, %arg4: memref<1x256xf32, #tpu.memory_space<vmem>>, %arg5: memref<256x64xf32, #tpu.memory_space<vmem>>, %arg6: memref<1x64xf32, #tpu.memory_space<vmem>>, %arg7: memref<16x64xf32, #tpu.memory_space<vmem>>, %arg8: memref<16x64xf32, #tpu.memory_space<vmem>>) attributes {dimension_semantics = [#tpu.dimension_semantics<parallel>, #tpu.dimension_semantics<arbitrary>], iteration_bounds = array<i64: 1, 1>, scalar_prefetch = 0 : i64, scratch_operands = 1 : i64, tpu.core_type = #tpu.core_type<tc>, window_params = [{transform_indices = @transform_0, window_bounds = array<i64: 16, 64>}, {transform_indices = @transform_1, window_bounds = array<i64: 64, 256>}, {transform_indices = @transform_2, window_bounds = array<i64: 1, 256>}, {transform_indices = @transform_3, window_bounds = array<i64: 256, 64>}, {pipeline_mode = #tpu.pipeline_mode<synchronous>, transform_indices = @transform_4, window_bounds = array<i64: 1, 64>}, {transform_indices = @transform_5, window_bounds = array<i64: 16, 64>}]} {
    %c0_i32 = arith.constant 0 : i32
    %0 = arith.cmpi eq, %arg1, %c0_i32 : i32
    %1 = arith.extui %0 : i1 to i32
    %c0_i32_0 = arith.constant 0 : i32
    %2 = arith.cmpi ne, %1, %c0_i32_0 : i32
    scf.if %2 {
      %cst_19 = arith.constant 0.000000e+00 : f32
      %30 = vector.broadcast %cst_19 : f32 to vector<16x64xf32>
      %c0_20 = arith.constant 0 : index
      %c0_21 = arith.constant 0 : index
      %31 = vector.load %arg8[%c0_20, %c0_21] : memref<16x64xf32, #tpu.memory_space<vmem>>, vector<16x64xf32>
      tpu.vector_store %arg8[%c0_20, %c0_21], %30 {strides = array<i32>} : memref<16x64xf32, #tpu.memory_space<vmem>>, vector<16x64xf32>,
    } else {
    }
    %c0 = arith.constant 0 : index
    %c0_1 = arith.constant 0 : index
    %3 = vector.load %arg2[%c0, %c0_1] : memref<16x64xf32, #tpu.memory_space<vmem>>, vector<16x64xf32>
    %c0_2 = arith.constant 0 : index
    %c0_3 = arith.constant 0 : index
    %4 = vector.load %arg3[%c0_2, %c0_3] : memref<64x256xf32, #tpu.memory_space<vmem>>, vector<64x256xf32>
    %cst = arith.constant dense<0.000000e+00> : vector<16x256xf32>
    %5 = tpu.matmul %3, %4, %cst {dimension_numbers = #tpu.dot_dimension_numbers<[1], [0], [0], [1], [0, 0, 1, 1], [], []>} : vector<16x64xf32>, vector<64x256xf32>, vector<16x256xf32> -> vector<16x256xf32>
    %c0_4 = arith.constant 0 : index
    %c0_5 = arith.constant 0 : index
    %6 = vector.load %arg4[%c0_4, %c0_5] : memref<1x256xf32, #tpu.memory_space<vmem>>, vector<1x256xf32>
    %7 = vector.broadcast %6 : vector<1x256xf32> to vector<16x256xf32>
    %8 = arith.addf %5, %7 : vector<16x256xf32>
    %cst_6 = arith.constant 5.000000e-01 : f32
    %9 = vector.broadcast %cst_6 : f32 to vector<16x256xf32>
    %10 = arith.mulf %9, %8 : vector<16x256xf32>
    %cst_7 = arith.constant 4.471500e-02 : f32
    %11 = vector.broadcast %cst_7 : f32 to vector<16x256xf32>
    %12 = arith.mulf %11, %8 : vector<16x256xf32>
    %13 = arith.mulf %12, %8 : vector<16x256xf32>
    %14 = arith.mulf %13, %8 : vector<16x256xf32>
    %15 = arith.addf %8, %14 : vector<16x256xf32>
    %cst_8 = arith.constant 0.797884583 : f32
    %16 = vector.broadcast %cst_8 : f32 to vector<16x256xf32>
    %17 = arith.mulf %16, %15 : vector<16x256xf32>
    %18 = math.tanh %17 : vector<16x256xf32>
    %cst_9 = arith.constant 1.000000e+00 : f32
    %19 = vector.broadcast %cst_9 : f32 to vector<16x256xf32>
    %20 = arith.addf %19, %18 : vector<16x256xf32>
    %21 = arith.mulf %10, %20 : vector<16x256xf32>
    %c0_10 = arith.constant 0 : index
    %c0_11 = arith.constant 0 : index
    %22 = vector.load %arg8[%c0_10, %c0_11] : memref<16x64xf32, #tpu.memory_space<vmem>>, vector<16x64xf32>
    %c0_12 = arith.constant 0 : index
    %c0_13 = arith.constant 0 : index
    %23 = vector.load %arg5[%c0_12, %c0_13] : memref<256x64xf32, #tpu.memory_space<vmem>>, vector<256x64xf32>
    %cst_14 = arith.constant dense<0.000000e+00> : vector<16x64xf32>
    %24 = tpu.matmul %21, %23, %cst_14 {dimension_numbers = #tpu.dot_dimension_numbers<[1], [0], [0], [1], [0, 0, 1, 1], [], []>} : vector<16x256xf32>, vector<256x64xf32>, vector<16x64xf32> -> vector<16x64xf32>
    %25 = arith.addf %22, %24 : vector<16x64xf32>
    %c0_15 = arith.constant 0 : index
    %c0_16 = arith.constant 0 : index
    %26 = vector.load %arg8[%c0_15, %c0_16] : memref<16x64xf32, #tpu.memory_space<vmem>>, vector<16x64xf32>
    tpu.vector_store %arg8[%c0_15, %c0_16], %25 {strides = array<i32>} : memref<16x64xf32, #tpu.memory_space<vmem>>, vector<16x64xf32>,
    %c0_i32_17 = arith.constant 0 : i32
    %27 = arith.cmpi eq, %arg1, %c0_i32_17 : i32
    %28 = arith.extui %27 : i1 to i32
    %c0_i32_18 = arith.constant 0 : i32
    %29 = arith.cmpi ne, %28, %c0_i32_18 : i32
    scf.if %29 {
      %c0_19 = arith.constant 0 : index
      %c0_20 = arith.constant 0 : index
      %30 = vector.load %arg8[%c0_19, %c0_20] : memref<16x64xf32, #tpu.memory_space<vmem>>, vector<16x64xf32>
      %c0_21 = arith.constant 0 : index
      %c0_22 = arith.constant 0 : index
      %31 = vector.load %arg6[%c0_21, %c0_22] : memref<1x64xf32, #tpu.memory_space<vmem>>, vector<1x64xf32>
      %32 = vector.broadcast %31 : vector<1x64xf32> to vector<16x64xf32>
      %33 = arith.addf %30, %32 : vector<16x64xf32>
      %c0_23 = arith.constant 0 : index
      %c0_24 = arith.constant 0 : index
      %34 = vector.load %arg7[%c0_23, %c0_24] : memref<16x64xf32, #tpu.memory_space<vmem>>, vector<16x64xf32>
      tpu.vector_store %arg7[%c0_23, %c0_24], %33 {strides = array<i32>} : memref<16x64xf32, #tpu.memory_space<vmem>>, vector<16x64xf32>,
    } else {
    }
    return
  }
  func.func @transform_0(%arg0: i32, %arg1: i32) -> (i32, i32) {
    %c0_i32 = arith.constant 0 : i32
    %c0_i32_0 = arith.constant 0 : i32
    return %arg0, %c0_i32 : i32, i32
  }
  func.func @transform_1(%arg0: i32, %arg1: i32) -> (i32, i32) {
    %c0_i32 = arith.constant 0 : i32
    %c0_i32_0 = arith.constant 0 : i32
    return %c0_i32, %arg1 : i32, i32
  }
  func.func @transform_2(%arg0: i32, %arg1: i32) -> (i32, i32) {
    %c0_i32 = arith.constant 0 : i32
    %c0_i32_0 = arith.constant 0 : i32
    return %c0_i32, %arg1 : i32, i32
  }
  func.func @transform_3(%arg0: i32, %arg1: i32) -> (i32, i32) {
    %c0_i32 = arith.constant 0 : i32
    %c0_i32_0 = arith.constant 0 : i32
    return %arg1, %c0_i32 : i32, i32
  }
  func.func @transform_4(%arg0: i32, %arg1: i32) -> (i32, i32) {
    %c0_i32 = arith.constant 0 : i32
    %c0_i32_0 = arith.constant 0 : i32
    %c0_i32_1 = arith.constant 0 : i32
    return %c0_i32, %c0_i32_0 : i32, i32
  }
  func.func @transform_5(%arg0: i32, %arg1: i32) -> (i32, i32) {
    %c0_i32 = arith.constant 0 : i32
    %c0_i32_0 = arith.constant 0 : i32
    return %arg0, %c0_i32 : i32, i32
  }
}

</mosaic_0001>

<bundles_post_ra>
// kernel: tpu_custom_call.1
= control target key start
LH: loop header
LB: loop body
LE: loop exit
PB: predicated region body
PF: predicated region fallthrough
CT: control target
= control target key end

     0   :  { %s502_s0 = inlined_call_operand.vmem [shape: f32[16,64], index: 0, kind: input, shape index: {}]   ;;  %s503_s1 = inlined_call_operand.vmem [shape: f32[64,256], index: 1, kind: input, shape index: {}]   ;;  %s504_s2 = inlined_call_operand.vmem [shape: f32[1,256], index: 2, kind: input, shape index: {}]   ;;  %s505_s3 = inlined_call_operand.vmem [shape: f32[256,64], index: 3, kind: input, shape index: {}]   ;;  %s506_s4 = inlined_call_operand.vmem [shape: f32[1,64], index: 4, kind: input, shape index: {}]   ;;  %s507_s5 = inlined_call_operand.hbm [shape: f32[16,64], index: 5, kind: output, shape index: {}]  }
   0x1   :  { %v44_v0 = vld [vmem:[%s503_s1 + $0x70] sm:$0xff]  ;;  %v45_v1 = vld [vmem:[%s503_s1 + $0x78] sm:$0xff]  ;;  %v42_v2 = vld [vmem:[%s503_s1 + $0x60] sm:$0xff] }
   0x2   :  { %67 = vmatpush.msra.mxu0 %v44_v0  ;;  %90 = vmatpush.msra.mxu1 %v45_v1  ;;  %v43_v3 = vld [vmem:[%s503_s1 + $0x68] sm:$0xff]  ;;  %v40_v4 = vld [vmem:[%s503_s1 + $0x50] sm:$0xff]  ;;  %v41_v5 = vld [vmem:[%s503_s1 + $0x58] sm:$0xff] }
   0x3   :  { %v38_v6 = vld [vmem:[%s503_s1 + $0x40] sm:$0xff]  ;;  %v39_v7 = vld [vmem:[%s503_s1 + $0x48] sm:$0xff]  ;;  %v36_v8 = vld [vmem:[%s503_s1 + $0x30] sm:$0xff] }
   0x4   :  { %68 = vmatpush.msra.mxu0 %v42_v2  ;;  %91 = vmatpush.msra.mxu1 %v43_v3  ;;  %v37_v9 = vld [vmem:[%s503_s1 + $0x38] sm:$0xff]  ;;  %v157_v12 = vld [vmem:[%s505_s3 + $0x70] sm:$0xff]  ;;  %v34_v14 = vld [vmem:[%s503_s1 + $0x20] sm:$0xff] }
   0x5   :  { %v158_v10 = vld [vmem:[%s505_s3 + $0x78] sm:$0xff]  ;;  %v173_v13 = vld [vmem:[%s505_s3 + $0xf0] sm:$0xff]  ;;  %v35_v15 = vld [vmem:[%s503_s1 + $0x28] sm:$0xff] }
   0x6   :  { %69 = vmatpush.msra.mxu0 %v40_v4  ;;  %92 = vmatpush.msra.mxu1 %v41_v5  ;;  %v174_v11 = vld [vmem:[%s505_s3 + $0xf8] sm:$0xff]  ;;  %v156_v16 = vld [vmem:[%s505_s3 + $0x68] sm:$0xff] }
   0x7   :  { %175 = vmatpush.msra.mxu2 %v158_v10  ;;  %198 = vmatpush.msra.mxu3 %v174_v11  ;;  %v172_v17 = vld [vmem:[%s505_s3 + $0xe8] sm:$0xff] }
   0x8   :  { %70 = vmatpush.msra.mxu0 %v38_v6  ;;  %93 = vmatpush.msra.mxu1 %v39_v7 }
   0xa   :  { %71 = vmatpush.msra.mxu0 %v36_v8  ;;  %94 = vmatpush.msra.mxu1 %v37_v9 }
   0xb   :  { %10 = vsyncpa [#allocation4], 0  ;;  %v32_v18 = vld [vmem:[%s503_s1 + $0x10] sm:$0xff]  ;;  %v33_v19 = vld [vmem:[%s503_s1 + $0x18] sm:$0xff]  ;;  %176 = vmatpush.msra.mxu2 %v157_v12  ;;  %199 = vmatpush.msra.mxu3 %v173_v13  ;;  %vm25_vm0 = vcmask 523264   ;;  %s300_s16 = smov [#allocation3]  }
   0xc   :  { %72 = vmatpush.msra.mxu0 %v34_v14  ;;  %95 = vmatpush.msra.mxu1 %v35_v15  ;;  %v155_v20 = vld [vmem:[%s505_s3 + $0x60] sm:$0xff]  ;;  %v31_v23 = vld [vmem:[%s503_s1 + $0x8] sm:$0xff]  ;;  %v154_v26 = vld [vmem:[%s505_s3 + $0x58] sm:$0xff]  ;;  %s242_s17 = sshll.u32 %s300_s16, 4  ;;  %s302_s20 = smov 8   ;;  %s243_s17 = int_to_ptr.vmem [resolvable:$true] %s242_s17 }
   0xd   :  { %v171_v21 = vld [vmem:[%s505_s3 + $0xe0] sm:$0xff]  ;;  %177 = vmatpush.msra.mxu2 %v156_v16  ;;  %200 = vmatpush.msra.mxu3 %v172_v17  ;;  %v29_v25 = vld [vmem:[%s502_s0 + $0x8] sm:$0xff]  ;;  %v170_v27 = vld [vmem:[%s505_s3 + $0xd8] sm:$0xff] }
   0xe   :  { %v30_v22 = vld [vmem:[%s503_s1] sm:$0xff]  ;;  %73 = vmatpush.msra.mxu0 %v32_v18  ;;  %96 = vmatpush.msra.mxu1 %v33_v19  ;;  %v153_v28 = vld [vmem:[%s505_s3 + $0x50] sm:$0xff]  ;;  %v152_v30 = vld [vmem:[%s505_s3 + $0x48] sm:$0xff]  ;;  %s244_s1 = sshll.u32 %s507_s5, 4  ;;  %s245_s1 = int_to_ptr.hbm [resolvable:$true] %s244_s1 }
   0xf   :  { %v28_v24 = vld [vmem:[%s502_s0] sm:$0xff]  ;;  %178 = vmatpush.msra.mxu2 %v155_v20  ;;  %201 = vmatpush.msra.mxu3 %v171_v21  ;;  %v169_v29 = vld [vmem:[%s505_s3 + $0xd0] sm:$0xff]  ;;  %v168_v31 = vld [vmem:[%s505_s3 + $0xc8] sm:$0xff] }
  0x10   :  { %74 = vmatpush.msra.mxu0 %v30_v22  ;;  %97 = vmatpush.msra.mxu1 %v31_v23  ;;  %v151_v32 = vld [vmem:[%s505_s3 + $0x40] sm:$0xff]  ;;  %v150_v34 = vld [vmem:[%s505_s3 + $0x38] sm:$0xff]  ;;  %v149_v36 = vld [vmem:[%s505_s3 + $0x30] sm:$0xff] }
  0x11   :  { %256 = vmatmul.msk.f32.vlgmr.msra.gmra.mxu0 %vm25_vm0, %v28_v24  ;;  %258 = vmatmul.msk.f32.vlgmr.msra.gmra.mxu1 %vm25_vm0, %v28_v24  ;;  %v167_v33 = vld [vmem:[%s505_s3 + $0xc0] sm:$0xff]  ;;  %v166_v35 = vld [vmem:[%s505_s3 + $0xb8] sm:$0xff]  ;;  %v165_v37 = vld [vmem:[%s505_s3 + $0xb0] sm:$0xff] }
  0x12   :  { %179 = vmatpush.msra.mxu2 %v154_v26  ;;  %202 = vmatpush.msra.mxu3 %v170_v27  ;;  %v148_v38 = vld [vmem:[%s505_s3 + $0x28] sm:$0xff]  ;;  %v147_v40 = vld [vmem:[%s505_s3 + $0x20] sm:$0xff]  ;;  %v146_v42 = vld [vmem:[%s505_s3 + $0x18] sm:$0xff] }
  0x13   :  { %v164_v39 = vld [vmem:[%s505_s3 + $0xa8] sm:$0xff]  ;;  %v163_v41 = vld [vmem:[%s505_s3 + $0xa0] sm:$0xff]  ;;  %v162_v43 = vld [vmem:[%s505_s3 + $0x98] sm:$0xff] }
  0x14   :  { %180 = vmatpush.msra.mxu2 %v153_v28  ;;  %203 = vmatpush.msra.mxu3 %v169_v29  ;;  %v145_v44 = vld [vmem:[%s505_s3 + $0x10] sm:$0xff]  ;;  %v144_v46 = vld [vmem:[%s505_s3 + $0x8] sm:$0xff]  ;;  %v143_v48 = vld [vmem:[%s505_s3] sm:$0xff] }
  0x15   :  { %v161_v45 = vld [vmem:[%s505_s3 + $0x90] sm:$0xff]  ;;  %v160_v47 = vld [vmem:[%s505_s3 + $0x88] sm:$0xff]  ;;  %v159_v49 = vld [vmem:[%s505_s3 + $0x80] sm:$0xff] }
  0x16   :  { %181 = vmatpush.msra.mxu2 %v152_v30  ;;  %204 = vmatpush.msra.mxu3 %v168_v31  ;;  %v46_v50 = vld [vmem:[%s504_s2] sm:$0x3] }
  0x17   :  { %v48_v51 = vperm.slane %v46_v50, 0  ;;  %v49_v52 = vperm.slane %v46_v50, 1 }
  0x18   :  { %182 = vmatpush.msra.mxu2 %v151_v32  ;;  %205 = vmatpush.msra.mxu3 %v167_v33  ;;  %v299_v33 = vmov 0.0  }
  0x19   :  { %257 = vmatmul.msk.f32.gmra.mxu0 %vm25_vm0, %v29_v25  ;;  %259 = vmatmul.msk.f32.gmra.mxu1 %vm25_vm0, %v29_v25  ;;  %26 = vst.msk [vmem:[#allocation2] sm:$0xff] %vm25_vm0, %v299_v33 }
  0x1a   :  { %183 = vmatpush.msra.mxu2 %v150_v34  ;;  %206 = vmatpush.msra.mxu3 %v166_v35  ;;  %27 = vst.msk [vmem:[#allocation2 + $0x8] sm:$0xff] %vm25_vm0, %v299_v33 }
  0x1c   :  { %184 = vmatpush.msra.mxu2 %v149_v36  ;;  %207 = vmatpush.msra.mxu3 %v165_v37 }
  0x1e   :  { %185 = vmatpush.msra.mxu2 %v148_v38  ;;  %208 = vmatpush.msra.mxu3 %v164_v39 }
  0x20   :  { %186 = vmatpush.msra.mxu2 %v147_v40  ;;  %209 = vmatpush.msra.mxu3 %v163_v41  ;;  %v141_v35 = vld [vmem:[#allocation2] sm:$0xff] }
  0x21   :  { %v142_v40 = vld [vmem:[#allocation2 + $0x8] sm:$0xff] }
  0x22   :  { %187 = vmatpush.msra.mxu2 %v146_v42  ;;  %210 = vmatpush.msra.mxu3 %v162_v43  ;;  %v264_v42 = vld [vmem:[%s506_s4] ss:$0 sm:$0xff]  ;;  %s301_s4 = smov 128  }
  0x24   :  { %188 = vmatpush.msra.mxu2 %v145_v44  ;;  %211 = vmatpush.msra.mxu3 %v161_v45 }
  0x26   :  { %189 = vmatpush.msra.mxu2 %v144_v46  ;;  %212 = vmatpush.msra.mxu3 %v160_v47 }
  0x28   :  { %190 = vmatpush.msra.mxu2 %v143_v48  ;;  %213 = vmatpush.msra.mxu3 %v159_v49 }
  0x8e   :  { %v76_v53 = vpop.f32.mrf.mxu0  ;;  %v99_v54 = vpop.f32.mrf.mxu1 }
  0x8f   :  { %v77_v55 = vadd.f32 %v76_v53, %v48_v51  ;;  %v100_v56 = vadd.f32 %v99_v54, %v49_v52 }
  0x91   :  { %v109_v57 = vmul.f32 0.044715, %v77_v55  ;;  %v110_v58 = vmul.f32 0.044715, %v100_v56  ;;  %v105_v17 = vmul.f32 0.5, %v77_v55  ;;  %v106_v21 = vmul.f32 0.5, %v100_v56 }
  0x93   :  { %v113_v59 = vmul.f32 %v109_v57, %v77_v55  ;;  %v114_v60 = vmul.f32 %v110_v58, %v100_v56 }
  0x95   :  { %v117_v61 = vmul.f32 %v113_v59, %v77_v55  ;;  %v118_v62 = vmul.f32 %v114_v60, %v100_v56 }
  0x96   :  { %v79_v63 = vpop.f32.mrf.mxu0  ;;  %v102_v0 = vpop.f32.mrf.mxu1 }
  0x97   :  { %v80_v1 = vadd.f32 %v79_v63, %v48_v51  ;;  %v103_v2 = vadd.f32 %v102_v0, %v49_v52  ;;  %v121_v3 = vadd.f32 %v117_v61, %v77_v55  ;;  %v122_v4 = vadd.f32 %v118_v62, %v100_v56 }
  0x99   :  { %v125_v5 = vmul.f32 0.7978846, %v121_v3  ;;  %v126_v6 = vmul.f32 0.7978846, %v122_v4  ;;  %v111_v7 = vmul.f32 0.044715, %v80_v1 }
  0x9a   :  { %v112_v8 = vmul.f32 0.044715, %v103_v2  ;;  %v107_v27 = vmul.f32 0.5, %v80_v1  ;;  %v108_v29 = vmul.f32 0.5, %v103_v2 }
  0x9b   :  { %265 = vtanh.f32 %v125_v5  ;;  %v115_v9 = vmul.f32 %v111_v7, %v80_v1 }
  0x9c   :  { %267 = vtanh.f32 %v126_v6  ;;  %v116_v10 = vmul.f32 %v112_v8, %v103_v2 }
  0x9d   :  { %v119_v11 = vmul.f32 %v115_v9, %v80_v1 }
  0x9e   :  { %v120_v12 = vmul.f32 %v116_v10, %v103_v2 }
  0x9f   :  { %v123_v13 = vadd.f32 %v119_v11, %v80_v1 }
  0xa0   :  { %v124_v14 = vadd.f32 %v120_v12, %v103_v2 }
  0xa1   :  { %v266_v15 = vpop.eup %265  ;;  %v127_v19 = vmul.f32 0.7978846, %v123_v13 }
  0xa2   :  { %v268_v16 = vpop.eup %267  ;;  %v133_v18 = vadd.f32 1.0, %v266_v15  ;;  %v128_v20 = vmul.f32 0.7978846, %v124_v14 }
  0xa3   :  { %v134_v22 = vadd.f32 1.0, %v268_v16  ;;  %269 = vtanh.f32 %v127_v19 }
  0xa4   :  { %v137_v23 = vmul.f32 %v133_v18, %v105_v17  ;;  %271 = vtanh.f32 %v128_v20 }
  0xa5   :  { %v138_v24 = vmul.f32 %v134_v22, %v106_v21 }
  0xa6   :  { %191 = vmatmul.f32.vlgmr.msra.gmra.mxu2 %v137_v23 }
  0xa7   :  { %214 = vmatmul.f32.vlgmr.msra.gmra.mxu3 %v138_v24 }
  0xa9   :  { %v270_v25 = vpop.eup %269 }
  0xaa   :  { %v272_v26 = vpop.eup %271  ;;  %v135_v28 = vadd.f32 1.0, %v270_v25 }
  0xab   :  { %v136_v30 = vadd.f32 1.0, %v272_v26 }
  0xac   :  { %v139_v31 = vmul.f32 %v135_v28, %v107_v27 }
  0xad   :  { %v140_v32 = vmul.f32 %v136_v30, %v108_v29 }
  0xae   :  { %194 = vmatmul.f32.gmra.mxu2 %v139_v31 }
  0xaf   :  { %217 = vmatmul.f32.gmra.mxu3 %v140_v32 }
 0x129   :  { %v192_v34 = vpop.f32.mrf.mxu2 }
 0x12a   :  { %v215_v36 = vpop.f32.mrf.mxu3 }
 0x12b   :  { %v216_v37 = vadd.f32 %v215_v36, %v192_v34 }
 0x12d   :  { %v221_v38 = vadd.f32 %v216_v37, %v141_v35 }
 0x12f   :  { %223 = vst.msk [vmem:[#allocation2] sm:$0xff] %vm25_vm0, %v221_v38 }
 0x131   :  { %v195_v39 = vpop.f32.mrf.mxu2 }
 0x132   :  { %v218_v41 = vpop.f32.mrf.mxu3 }
 0x133   :  { %v219_v43 = vadd.f32 %v218_v41, %v195_v39 }
 0x135   :  { %v222_v44 = vadd.f32 %v219_v43, %v142_v40 }
 0x136   :  { %v228_v45 = vld [vmem:[#allocation2] sm:$0xff] }
 0x137   :  { %v234_v46 = vadd.f32 %v264_v42, %v228_v45  ;;  %224 = vst.msk [vmem:[#allocation2 + $0x8] sm:$0xff] %vm25_vm0, %v222_v44 }
 0x139   :  { %236 = vst.msk [vmem:[#allocation3] sm:$0xff] %vm25_vm0, %v234_v46 }
 0x13e   :  { %v229_v47 = vld [vmem:[#allocation2 + $0x8] sm:$0xff] }
 0x13f   :  { %v235_v48 = vadd.f32 %v264_v42, %v229_v47 }
 0x141   :  { %237 = vst.msk [vmem:[#allocation3 + $0x8] sm:$0xff] %vm25_vm0, %v235_v48 }
 0x142   :  { %250 = dma.vmem_to_hbm [thread:$0]  %s243_s17, 256, %s245_s1, [#allocation4], %s301_s4, %s301_s4, %s302_s20  }
 0x143   :  { %297 = dma.done.wait [#allocation4], 256  }
 0x144   :  { %298 = vsyncadd [#allocation4], 4294967040 }
 0x145   :  { %255 = vsyncpa [#allocation4], 1 }

</bundles_post_ra>
